<compile_context>
chip_gen: v6e
topology: v6e:2x2x1
jax: 0.10.0
libtpu: 0.0.40
codegen_flags: <defaults>
</compile_context>

<pallas_src>
import functools

import jax
import jax.numpy as jnp
from jax.experimental import pallas as pl
from jax.experimental.pallas import tpu as pltpu

P_DROP = 0.2


def mlp_kernel(x_ref, w1_ref, b1_ref, w2_ref, b2_ref, w3_ref, b3_ref, *rest,
               training, compute_dtype):
    if training:
        m1_ref, m2_ref, o_ref = rest
    else:
        (o_ref,) = rest

    cd = compute_dtype

    # hidden_1 + ReLU (+ dropout)    [TB, 896] @ [896, 128], f32 accumulation
    h = jnp.dot(x_ref[...], w1_ref[...], preferred_element_type=jnp.float32)
    h = jnp.maximum(h + b1_ref[...], 0.0)
    if training:
        h = h * m1_ref[...].astype(jnp.float32)   # mask is pre-scaled by 1/(1-p)

    # hidden_2 + ReLU (+ dropout)    [TB, 128] @ [128, 64]
    h = jnp.dot(h.astype(cd), w2_ref[...], preferred_element_type=jnp.float32)
    h = jnp.maximum(h + b2_ref[...], 0.0)
    if training:
        h = h * m2_ref[...].astype(jnp.float32)

    # output layer                    [TB, 64] @ [64, 10]
    logits = jnp.dot(h.astype(cd), w3_ref[...], preferred_element_type=jnp.float32)
    logits = logits + b3_ref[...]

    # log-softmax over dim=1 (last axis), all in f32
    m = jnp.max(logits, axis=-1, keepdims=True)
    z = logits - m
    lse = jnp.log(jnp.sum(jnp.exp(z), axis=-1, keepdims=True))
    o_ref[...] = (z - lse).astype(o_ref.dtype)


def make_dropout_masks(key, batch, p=P_DROP):
    """Pre-scaled inverted-dropout keep masks (values 0 or 1/(1-p))."""
    k1, k2 = jax.random.split(key)
    scale = 1.0 / (1.0 - p)
    m1 = (jax.random.uniform(k1, (batch, 128)) >= p).astype(jnp.float32) * scale
    m2 = (jax.random.uniform(k2, (batch, 64)) >= p).astype(jnp.float32) * scale
    return m1, m2


def network_forward(x, params, *, dropout_masks=None, block_batch=512,
                    compute_dtype=jnp.bfloat16):
    """Forward pass. dropout_masks=None -> eval mode (dropout is identity)."""
    w1, b1, w2, b2, w3, b3 = params
    B, D_in = x.shape
    D_out = w3.shape[1]
    H1, H2 = w1.shape[1], w2.shape[1]
    training = dropout_masks is not None
    cd = compute_dtype

    # Pad feature dim 784 -> 896 (= 7*128) with zeros for lane-aligned tiles.
    D_pad = -(-D_in // 128) * 128
    if D_pad != D_in:
        x = jnp.pad(x, ((0, 0), (0, D_pad - D_in)))
        w1 = jnp.pad(w1, ((0, D_pad - D_in), (0, 0)))

    # Batch tile (multiple of 8 sublanes); pad batch up to a tile multiple.
    TB = max(8, (int(min(block_batch, B)) + 7) // 8 * 8)
    Bp = -(-B // TB) * TB
    if Bp != B:
        x = jnp.pad(x, ((0, Bp - B), (0, 0)))

    # MXU operands in compute dtype (bf16); biases stay f32.
    xc = x.astype(cd)
    w1c, w2c, w3c = w1.astype(cd), w2.astype(cd), w3.astype(cd)

    const = lambda shape: pl.BlockSpec(shape, lambda i: (0, 0))
    rowblk = lambda cols: pl.BlockSpec((TB, cols), lambda i: (i, 0))

    in_specs = [
        rowblk(D_pad),                       # x: new tile each grid step
        const(w1c.shape), const(b1.shape),   # weights/biases resident in VMEM
        const(w2c.shape), const(b2.shape),
        const(w3c.shape), const(b3.shape),
    ]
    inputs = [xc, w1c, b1, w2c, b2, w3c, b3]

    if training:
        m1, m2 = dropout_masks
        if Bp != B:
            m1 = jnp.pad(m1, ((0, Bp - B), (0, 0)), constant_values=1.0)
            m2 = jnp.pad(m2, ((0, Bp - B), (0, 0)), constant_values=1.0)
        in_specs += [rowblk(H1), rowblk(H2)]
        inputs += [m1.astype(cd), m2.astype(cd)]

    kernel = functools.partial(mlp_kernel, training=training, compute_dtype=cd)

    out = pl.pallas_call(
        kernel,
        out_shape=jax.ShapeDtypeStruct((Bp, D_out), jnp.float32),
        grid=(Bp // TB,),
        in_specs=in_specs,
        out_specs=pl.BlockSpec((TB, D_out), lambda i: (i, 0)),
        compiler_params=pltpu.CompilerParams(
            dimension_semantics=("parallel",)),   # v7x: split batch tiles across TCs
    )(*inputs)
    return out[:B]


def init_params(key):
    """Deterministic init mimicking PyTorch nn.Linear (U(-1/sqrt(fan_in), +...))."""
    dims = [(784, 128), (128, 64), (64, 10)]
    params = []
    for (fan_in, fan_out) in dims:
        key, kw, kb = jax.random.split(key, 3)
        bound = 1.0 / jnp.sqrt(fan_in)
        w = jax.random.uniform(kw, (fan_in, fan_out), jnp.float32, -bound, bound)
        b = jax.random.uniform(kb, (1, fan_out), jnp.float32, -bound, bound)
        params += [w, b]
    return tuple(params)


def reference(x, params, masks=None, compute_dtype=jnp.bfloat16):
    """Pure-JAX reference with the same bf16-operand / f32-accumulate math."""
    w1, b1, w2, b2, w3, b3 = params
    cd = compute_dtype
    h = jnp.dot(x.astype(cd), w1.astype(cd),
                preferred_element_type=jnp.float32) + b1
    h = jnp.maximum(h, 0.0)
    if masks is not None:
        h = h * masks[0].astype(cd).astype(jnp.float32)
    h = jnp.dot(h.astype(cd), w2.astype(cd),
                preferred_element_type=jnp.float32) + b2
    h = jnp.maximum(h, 0.0)
    if masks is not None:
        h = h * masks[1].astype(cd).astype(jnp.float32)
    logits = jnp.dot(h.astype(cd), w3.astype(cd),
                     preferred_element_type=jnp.float32) + b3
    return jax.nn.log_softmax(logits, axis=1)


if __name__ == "__main__":
    key = jax.random.PRNGKey(0)
    kx, kp, kd = jax.random.split(key, 3)

    B = 32
    x = jax.random.normal(kx, (B, 784), dtype=jnp.float32)
    params = init_params(kp)

    # Eval mode (dropout = identity). block_batch=8 -> 4 pipelined batch tiles.
    out_eval = network_forward(x, params, block_batch=8)
    jax.block_until_ready(out_eval)
    ref_eval = reference(x, params)
    assert out_eval.shape == (B, 10)
    assert jnp.allclose(out_eval, ref_eval, atol=2e-3, rtol=2e-3), \
        "eval-mode mismatch vs reference"

    # Training mode (inverted dropout, p=0.2) with deterministic masks.
    masks = make_dropout_masks(kd, B)
    out_train = network_forward(x, params, dropout_masks=masks, block_batch=8)
    jax.block_until_ready(out_train)
    ref_train = reference(x, params, masks=masks)
    assert out_train.shape == (B, 10)
    assert jnp.allclose(out_train, ref_train, atol=2e-3, rtol=2e-3), \
        "train-mode mismatch vs reference"
    # log-softmax rows must exp-sum to ~1
    assert jnp.allclose(jnp.sum(jnp.exp(out_train), axis=1), 1.0, atol=1e-3)

    print("KERNEL_OK")
</pallas_src>

<mosaic_0001>
module attributes {stable_mosaic.version = 11 : i64} {
  func.func @mlp_kernel(%arg0: i32, %arg1: memref<8x896xbf16, #tpu.memory_space<vmem>>, %arg2: memref<896x128xbf16, #tpu.memory_space<vmem>>, %arg3: memref<1x128xf32, #tpu.memory_space<vmem>>, %arg4: memref<128x64xbf16, #tpu.memory_space<vmem>>, %arg5: memref<1x64xf32, #tpu.memory_space<vmem>>, %arg6: memref<64x10xbf16, #tpu.memory_space<vmem>>, %arg7: memref<1x10xf32, #tpu.memory_space<vmem>>, %arg8: memref<8x10xf32, #tpu.memory_space<vmem>>) attributes {dimension_semantics = [#tpu.dimension_semantics<parallel>], iteration_bounds = array<i64: 4>, scalar_prefetch = 0 : i64, scratch_operands = 0 : i64, tpu.core_type = #tpu.core_type<tc>, window_params = [{transform_indices = @transform_0, window_bounds = array<i64: 8, 896>}, {pipeline_mode = #tpu.pipeline_mode<synchronous>, transform_indices = @transform_1, window_bounds = array<i64: 896, 128>}, {pipeline_mode = #tpu.pipeline_mode<synchronous>, transform_indices = @transform_2, window_bounds = array<i64: 1, 128>}, {pipeline_mode = #tpu.pipeline_mode<synchronous>, transform_indices = @transform_3, window_bounds = array<i64: 128, 64>}, {pipeline_mode = #tpu.pipeline_mode<synchronous>, transform_indices = @transform_4, window_bounds = array<i64: 1, 64>}, {pipeline_mode = #tpu.pipeline_mode<synchronous>, transform_indices = @transform_5, window_bounds = array<i64: 64, 10>}, {pipeline_mode = #tpu.pipeline_mode<synchronous>, transform_indices = @transform_6, window_bounds = array<i64: 1, 10>}, {transform_indices = @transform_7, window_bounds = array<i64: 8, 10>}]} {
    %c0 = arith.constant 0 : index
    %c0_0 = arith.constant 0 : index
    %0 = vector.load %arg1[%c0, %c0_0] : memref<8x896xbf16, #tpu.memory_space<vmem>>, vector<8x896xbf16>
    %c0_1 = arith.constant 0 : index
    %c0_2 = arith.constant 0 : index
    %1 = vector.load %arg2[%c0_1, %c0_2] : memref<896x128xbf16, #tpu.memory_space<vmem>>, vector<896x128xbf16>
    %cst = arith.constant dense<0.000000e+00> : vector<8x128xf32>
    %2 = tpu.matmul %0, %1, %cst {dimension_numbers = #tpu.dot_dimension_numbers<[1], [0], [0], [1], [0, 0, 1, 1], [], []>} : vector<8x896xbf16>, vector<896x128xbf16>, vector<8x128xf32> -> vector<8x128xf32>
    %c0_3 = arith.constant 0 : index
    %c0_4 = arith.constant 0 : index
    %3 = vector.load %arg3[%c0_3, %c0_4] : memref<1x128xf32, #tpu.memory_space<vmem>>, vector<1x128xf32>
    %4 = vector.broadcast %3 : vector<1x128xf32> to vector<8x128xf32>
    %5 = arith.addf %2, %4 : vector<8x128xf32>
    %cst_5 = arith.constant 0.000000e+00 : f32
    %6 = vector.broadcast %cst_5 : f32 to vector<8x128xf32>
    %7 = arith.maximumf %5, %6 : vector<8x128xf32>
    %8 = arith.truncf %7 : vector<8x128xf32> to vector<8x128xbf16>
    %c0_6 = arith.constant 0 : index
    %c0_7 = arith.constant 0 : index
    %9 = vector.load %arg4[%c0_6, %c0_7] : memref<128x64xbf16, #tpu.memory_space<vmem>>, vector<128x64xbf16>
    %cst_8 = arith.constant dense<0.000000e+00> : vector<8x64xf32>
    %10 = tpu.matmul %8, %9, %cst_8 {dimension_numbers = #tpu.dot_dimension_numbers<[1], [0], [0], [1], [0, 0, 1, 1], [], []>} : vector<8x128xbf16>, vector<128x64xbf16>, vector<8x64xf32> -> vector<8x64xf32>
    %c0_9 = arith.constant 0 : index
    %c0_10 = arith.constant 0 : index
    %11 = vector.load %arg5[%c0_9, %c0_10] : memref<1x64xf32, #tpu.memory_space<vmem>>, vector<1x64xf32>
    %12 = vector.broadcast %11 : vector<1x64xf32> to vector<8x64xf32>
    %13 = arith.addf %10, %12 : vector<8x64xf32>
    %cst_11 = arith.constant 0.000000e+00 : f32
    %14 = vector.broadcast %cst_11 : f32 to vector<8x64xf32>
    %15 = arith.maximumf %13, %14 : vector<8x64xf32>
    %16 = arith.truncf %15 : vector<8x64xf32> to vector<8x64xbf16>
    %c0_12 = arith.constant 0 : index
    %c0_13 = arith.constant 0 : index
    %17 = vector.load %arg6[%c0_12, %c0_13] : memref<64x10xbf16, #tpu.memory_space<vmem>>, vector<64x10xbf16>
    %cst_14 = arith.constant dense<0.000000e+00> : vector<8x10xf32>
    %18 = tpu.matmul %16, %17, %cst_14 {dimension_numbers = #tpu.dot_dimension_numbers<[1], [0], [0], [1], [0, 0, 1, 1], [], []>} : vector<8x64xbf16>, vector<64x10xbf16>, vector<8x10xf32> -> vector<8x10xf32>
    %c0_15 = arith.constant 0 : index
    %c0_16 = arith.constant 0 : index
    %19 = vector.load %arg7[%c0_15, %c0_16] : memref<1x10xf32, #tpu.memory_space<vmem>>, vector<1x10xf32>
    %20 = vector.broadcast %19 : vector<1x10xf32> to vector<8x10xf32>
    %21 = arith.addf %18, %20 : vector<8x10xf32>
    %cst_17 = arith.constant dense<0xFF800000> : vector<8xf32>
    %22 = vector.multi_reduction <maximumf>, %21, %cst_17 [1] : vector<8x10xf32> to vector<8xf32>
    %23 = vector.shape_cast %22 : vector<8xf32> to vector<8x1xf32>
    %24 = vector.broadcast %23 : vector<8x1xf32> to vector<8x10xf32>
    %25 = arith.subf %21, %24 : vector<8x10xf32>
    %26 = math.exp %25 : vector<8x10xf32>
    %cst_18 = arith.constant dense<0.000000e+00> : vector<8xf32>
    %27 = vector.multi_reduction <add>, %26, %cst_18 [1] : vector<8x10xf32> to vector<8xf32>
    %28 = vector.shape_cast %27 : vector<8xf32> to vector<8x1xf32>
    %29 = math.log %28 : vector<8x1xf32>
    %30 = vector.broadcast %29 : vector<8x1xf32> to vector<8x10xf32>
    %31 = arith.subf %25, %30 : vector<8x10xf32>
    %c0_19 = arith.constant 0 : index
    %c0_20 = arith.constant 0 : index
    %32 = vector.load %arg8[%c0_19, %c0_20] : memref<8x10xf32, #tpu.memory_space<vmem>>, vector<8x10xf32>
    tpu.vector_store %arg8[%c0_19, %c0_20], %31 {strides = array<i32>} : memref<8x10xf32, #tpu.memory_space<vmem>>, vector<8x10xf32>,
    return
  }
  func.func @transform_0(%arg0: i32) -> (i32, i32) {
    %c0_i32 = arith.constant 0 : i32
    %c0_i32_0 = arith.constant 0 : i32
    return %arg0, %c0_i32 : i32, i32
  }
  func.func @transform_1(%arg0: i32) -> (i32, i32) {
    %c0_i32 = arith.constant 0 : i32
    %c0_i32_0 = arith.constant 0 : i32
    %c0_i32_1 = arith.constant 0 : i32
    return %c0_i32, %c0_i32_0 : i32, i32
  }
  func.func @transform_2(%arg0: i32) -> (i32, i32) {
    %c0_i32 = arith.constant 0 : i32
    %c0_i32_0 = arith.constant 0 : i32
    %c0_i32_1 = arith.constant 0 : i32
    return %c0_i32, %c0_i32_0 : i32, i32
  }
  func.func @transform_3(%arg0: i32) -> (i32, i32) {
    %c0_i32 = arith.constant 0 : i32
    %c0_i32_0 = arith.constant 0 : i32
    %c0_i32_1 = arith.constant 0 : i32
    return %c0_i32, %c0_i32_0 : i32, i32
  }
  func.func @transform_4(%arg0: i32) -> (i32, i32) {
    %c0_i32 = arith.constant 0 : i32
    %c0_i32_0 = arith.constant 0 : i32
    %c0_i32_1 = arith.constant 0 : i32
    return %c0_i32, %c0_i32_0 : i32, i32
  }
  func.func @transform_5(%arg0: i32) -> (i32, i32) {
    %c0_i32 = arith.constant 0 : i32
    %c0_i32_0 = arith.constant 0 : i32
    %c0_i32_1 = arith.constant 0 : i32
    return %c0_i32, %c0_i32_0 : i32, i32
  }
  func.func @transform_6(%arg0: i32) -> (i32, i32) {
    %c0_i32 = arith.constant 0 : i32
    %c0_i32_0 = arith.constant 0 : i32
    %c0_i32_1 = arith.constant 0 : i32
    return %c0_i32, %c0_i32_0 : i32, i32
  }
  func.func @transform_7(%arg0: i32) -> (i32, i32) {
    %c0_i32 = arith.constant 0 : i32
    %c0_i32_0 = arith.constant 0 : i32
    return %arg0, %c0_i32 : i32, i32
  }
}

</mosaic_0001>

<bundles_post_ra>
// kernel: tpu_custom_call.1
= control target key start
LH: loop header
LB: loop body
LE: loop exit
PB: predicated region body
PF: predicated region fallthrough
CT: control target
= control target key end

     0   :  { %12 = vsyncpa [#allocation3], 0  ;;  %s1631_s24 = smov 0   ;;  %s1754_s0 = inlined_call_operand.vmem [shape: bf16[32,896], index: 0, kind: input, shape index: {}]   ;;  %s1755_s1 = inlined_call_operand.hbm [shape: bf16[896,128], index: 1, kind: input, shape index: {}]   ;;  %s1756_s2 = inlined_call_operand.vmem [shape: f32[1,128], index: 2, kind: input, shape index: {}]   ;;  %s1757_s3 = inlined_call_operand.vmem [shape: bf16[128,64], index: 3, kind: input, shape index: {}]   ;;  %s1758_s4 = inlined_call_operand.vmem [shape: f32[1,64], index: 4, kind: input, shape index: {}]   ;;  %s1759_s5 = inlined_call_operand.vmem [shape: bf16[64,10], index: 5, kind: input, shape index: {}]   ;;  %s1760_s6 = inlined_call_operand.vmem [shape: f32[1,10], index: 6, kind: input, shape index: {}]   ;;  %s1761_s7 = inlined_call_operand.vmem [shape: f32[32,10], index: 7, kind: output, shape index: {}]  }
   0x1 LB: > { %s1637_s25 = sadd.s32 4294967295, %s1584_s24   ;;  %p1216_p0 = scmp.ge.s32.totalorder %s1584_s24, 1  ;;  %s1584_s24 = sphi %s1631_s24, %s18_s24  }
   0x2   : > { %p201_p1 = scmp.lt.s32.totalorder %s1584_s24, 5  ;;  %s1586_s26 = smov [#allocation2]  }
   0x3   : > { %s213_s27 = sshll.u32 %s1586_s26, 4  ;;  %p1454_p3 = scmp.eq.s32.totalorder %s1637_s25, 0  ;;  %s214_s27 = int_to_ptr.vmem [resolvable:$true] %s213_s27 }
   0x4   : > { %p1641_p2 = pnand %p1216_p0, %p201_p1  ;;  %s1559_s29 = scalar_lea.vmem %s214_s27, 7168 }
   0x5   : > { %p1560_p7 = scmp.ne.s32.totalorder %s214_s27, %s1559_s29  ;;  %p1567_p10 = scmp.lt.s32.totalorder %s214_s27, %s214_s27 }
   0x6   : > { %p1450_p4 = pneg %p1641_p2  ;;  %p1568_p11 = scmp.lt.s32.totalorder %s1559_s29, %s1559_s29 }
   0x8   : > { %p1451_p5 = pnand %p1454_p3, %p1450_p4  ;;  %p1569_p12 = por %p1568_p11, %p1567_p10 }
   0xa   : > { %p1550_p6 = pneg %p1451_p5 }
   0xc   : > { %p1562_p8 = pnand %p1560_p7, %p1550_p6 }
   0xe   : > { %p1563_p9 = pneg %p1562_p8 }
  0x10   : > { %p1570_p13 = pnand %p1569_p12, %p1563_p9 }
  0x12   : > { %1573 = shalt.err (!%p1570_p13)
}
  0x13   : > { %s1587_s30 = smov 64   ;;  %s1588_s8 = smov 4  }
  0x14   : > { %1453 = dma.hbm_to_vmem [thread:$0]  (!%p1451_p5), %s1755_s1, 7168, %s214_s27, [#allocation3], %s1587_s30, %s1587_s30, %s1588_s8  }
  0x15   : > { %252 = sbr.rel (%p1641_p2) target bundleno = 1007 (0x3ef), region = 48 }
  0x1a   : > { %1579 = dma.done.wait (%p1454_p3), [#allocation3], 7168  }
  0x1b   : > { %1581 = vsyncadd (%p1454_p3), [#allocation3], 4294960128  ;;  %v1469_v0 = vld [vmem:[#allocation2 + $0x78] sm:$0xff]   ;;  %v1473_v4 = vld [vmem:[#allocation2 + $0x70] sm:$0xff]   ;;  %p283_p0 = scmp.lt.s32.totalorder %s1637_s25, 3  ;;  %v1589_v39 = vmov 0.0  }
  0x1c   : > { %v1470_v1 = vld [vmem:[#allocation2 + $0xf8] sm:$0xff]   ;;  %1304 = vmatprep.subr.bf16.mxu0 %v1469_v0  ;;  %v1474_v5 = vld [vmem:[#allocation2 + $0xf0] sm:$0xff]   ;;  %v1477_v8 = vld [vmem:[#allocation2 + $0x68] sm:$0xff]   ;;  %vm1590_vm0 = vmmov 0   ;;  %vm1091_vm1 = vcmask 523264   ;;  %vm1135_vm2 = vcmask 80896  }
  0x1d   : > { %v1471_v2 = vld [vmem:[#allocation2 + $0x38] sm:$0xff]   ;;  %1326 = vmatprep.subr.bf16.mxu1 %v1470_v1  ;;  %v1475_v6 = vld [vmem:[#allocation2 + $0x30] sm:$0xff]   ;;  %v1478_v9 = vld [vmem:[#allocation2 + $0xe8] sm:$0xff]   ;;  %s1764_s25 = smov (!%p283_p0, %s1637_s25), 3 }
  0x1e   : > { %v1472_v3 = vld [vmem:[#allocation2 + $0xb8] sm:$0xff]   ;;  %1305 = vmatpush3.bf16.msra.mxu0 %v1471_v2  ;;  %v1476_v7 = vld [vmem:[#allocation2 + $0xb0] sm:$0xff]   ;;  %v1479_v10 = vld [vmem:[#allocation2 + $0x28] sm:$0xff]   ;;  %s1445_s11 = smul.u32 28, %s1764_s25  ;;  %s1222_s26 = sshll.u32 %s1764_s25, 3 }
  0x1f   : > { %1327 = vmatpush3.bf16.msra.mxu1 %v1472_v3  ;;  %1306 = vmatprep.subr.bf16.mxu0 %v1473_v4  ;;  %v1480_v11 = vld [vmem:[#allocation2 + $0xa8] sm:$0xff]   ;;  %v1481_v12 = vld [vmem:[#allocation2 + $0x60] sm:$0xff]   ;;  %v1485_v16 = vld [vmem:[#allocation2 + $0x58] sm:$0xff]   ;;  %s291_s29 = scalar_lea.vmem %s1761_s7, %s1222_s26 }
  0x20   : > { %1328 = vmatprep.subr.bf16.mxu1 %v1474_v5  ;;  %v1482_v13 = vld [vmem:[#allocation2 + $0xe0] sm:$0xff]   ;;  %v1486_v17 = vld [vmem:[#allocation2 + $0xd8] sm:$0xff]   ;;  %v1489_v20 = vld [vmem:[#allocation2 + $0x50] sm:$0xff]   ;;  %s1667_s14 = scalar_lea.vmem %s1754_s0, %s1445_s11 }
  0x21   : > { %v1483_v14 = vld [vmem:[#allocation2 + $0x20] sm:$0xff]   ;;  %v1487_v18 = vld [vmem:[#allocation2 + $0x18] sm:$0xff]   ;;  %v1490_v21 = vld [vmem:[#allocation2 + $0xd0] sm:$0xff]  }
  0x22   : > { %1307 = vmatpush3.bf16.msra.mxu0 %v1475_v6  ;;  %v1484_v15 = vld [vmem:[#allocation2 + $0xa0] sm:$0xff]   ;;  %v1488_v19 = vld [vmem:[#allocation2 + $0x98] sm:$0xff]   ;;  %v1491_v22 = vld [vmem:[#allocation2 + $0x10] sm:$0xff]  }
  0x23   : > { %1329 = vmatpush3.bf16.msra.mxu1 %v1476_v7  ;;  %1308 = vmatprep.subr.bf16.mxu0 %v1477_v8  ;;  %v1492_v23 = vld [vmem:[#allocation2 + $0x90] sm:$0xff]   ;;  %v1493_v24 = vld [vmem:[#allocation2 + $0x48] sm:$0xff]   ;;  %v1497_v28 = vld [vmem:[#allocation2 + $0x40] sm:$0xff]  }
  0x24   : > { %1330 = vmatprep.subr.bf16.mxu1 %v1478_v9  ;;  %v1494_v25 = vld [vmem:[#allocation2 + $0xc8] sm:$0xff]   ;;  %v1498_v29 = vld [vmem:[#allocation2 + $0xc0] sm:$0xff]   ;;  %v1505_v38 = vld [vmem:[#allocation2 + $0x178] sm:$0xff]  }
  0x25   : > { %v1495_v26 = vld [vmem:[#allocation2 + $0x8] sm:$0xff]   ;;  %v1499_v30 = vld [vmem:[#allocation2] sm:$0xff]   ;;  %v1506_v40 = vld [vmem:[#allocation2 + $0x138] sm:$0xff]  }
  0x26   : > { %1309 = vmatpush3.bf16.msra.mxu0 %v1479_v10  ;;  %v1496_v27 = vld [vmem:[#allocation2 + $0x88] sm:$0xff]   ;;  %v1500_v31 = vld [vmem:[#allocation2 + $0x80] sm:$0xff]   ;;  %v1507_v41 = vld [vmem:[#allocation2 + $0x1b8] sm:$0xff]  }
  0x27   : > { %1331 = vmatpush3.bf16.msra.mxu1 %v1480_v11  ;;  %1310 = vmatprep.subr.bf16.mxu0 %v1481_v12  ;;  %v293_v32 = vld [vmem:[%s1667_s14] sm:$0xff]  ;;  %v294_v33 = vld [vmem:[%s1667_s14 + $0x8] sm:$0xff]  ;;  %v1508_v42 = vld [vmem:[#allocation2 + $0x170] sm:$0xff]  }
  0x28   : > { %1332 = vmatprep.subr.bf16.mxu1 %v1482_v13  ;;  %v1224_v34 = vcombine.low %v293_v32, %v293_v32  ;;  %v1225_v35 = vcombine.high %v293_v32, %v293_v32  ;;  %v1226_v36 = vcombine.low %v294_v33, %v294_v33  ;;  %v1227_v37 = vcombine.high %v294_v33, %v294_v33  ;;  %v1509_v43 = vld [vmem:[#allocation2 + $0x130] sm:$0xff]   ;;  %v1511_v45 = vld [vmem:[#allocation2 + $0x168] sm:$0xff]   ;;  %v1514_v48 = vld [vmem:[#allocation2 + $0x160] sm:$0xff]  }
  0x29   : > { %v1510_v44 = vld [vmem:[#allocation2 + $0x1b0] sm:$0xff]   ;;  %v1512_v46 = vld [vmem:[#allocation2 + $0x128] sm:$0xff]   ;;  %v1515_v49 = vld [vmem:[#allocation2 + $0x120] sm:$0xff]  }
  0x2a   : > { %1311 = vmatpush3.bf16.msra.mxu0 %v1483_v14  ;;  %809 = vmatprep.mubr.bf16.mxu0 %v1225_v35  ;;  %v1513_v47 = vld [vmem:[#allocation2 + $0x1a8] sm:$0xff]   ;;  %v1516_v50 = vld [vmem:[#allocation2 + $0x1a0] sm:$0xff]   ;;  %v1517_v51 = vld [vmem:[#allocation2 + $0x158] sm:$0xff]  }
  0x2b   : > { %1333 = vmatpush3.bf16.msra.mxu1 %v1484_v15  ;;  %1312 = vmatprep.subr.bf16.mxu0 %v1485_v16  ;;  %v1518_v52 = vld [vmem:[#allocation2 + $0x118] sm:$0xff]   ;;  %v1520_v54 = vld [vmem:[#allocation2 + $0x150] sm:$0xff]   ;;  %v1523_v57 = vld [vmem:[#allocation2 + $0x148] sm:$0xff]  }
  0x2c   : > { %1334 = vmatprep.subr.bf16.mxu1 %v1486_v17  ;;  %849 = vmatprep.mubr.bf16.mxu1 %v1227_v37  ;;  %v1519_v53 = vld [vmem:[#allocation2 + $0x198] sm:$0xff]   ;;  %v1521_v55 = vld [vmem:[#allocation2 + $0x110] sm:$0xff]   ;;  %v1524_v58 = vld [vmem:[#allocation2 + $0x108] sm:$0xff]  }
  0x2d   : > { %v1522_v56 = vld [vmem:[#allocation2 + $0x190] sm:$0xff]   ;;  %v1525_v59 = vld [vmem:[#allocation2 + $0x188] sm:$0xff]   ;;  %v1526_v61 = vld [vmem:[#allocation2 + $0x140] sm:$0xff]  }
  0x2e   : > { %1313 = vmatpush3.bf16.msra.mxu0 %v1487_v18  ;;  %v295_v60 = vld [vmem:[%s1667_s14 + $0x10] sm:$0xff]  ;;  %v1527_v63 = vld [vmem:[#allocation2 + $0x100] sm:$0xff]   ;;  %v1531_v2 = vld [vmem:[%s1667_s14 + $0x18] ss:$0 sps:$4 sm:$0xff]  }
  0x2f   : > { %1335 = vmatpush3.bf16.msra.mxu1 %v1488_v19  ;;  %1314 = vmatprep.subr.bf16.mxu0 %v1489_v20  ;;  %v1229_v62 = vcombine.high %v295_v60, %v295_v60  ;;  %v1528_v0 = vld [vmem:[#allocation2 + $0x180] sm:$0xff]   ;;  %v1228_v1 = vcombine.low %v295_v60, %v295_v60  ;;  %v1532_v3 = vld [vmem:[%s1757_s3 + $0x38] sm:$0xff]   ;;  %v1533_v4 = vld [vmem:[%s1757_s3 + $0x30] sm:$0xff]  }
  0x30   : > { %1336 = vmatprep.subr.bf16.mxu1 %v1490_v21  ;;  %v1534_v5 = vld [vmem:[%s1757_s3 + $0x28] sm:$0xff]   ;;  %v1535_v6 = vld [vmem:[%s1757_s3 + $0x20] sm:$0xff]   ;;  %v1536_v7 = vld [vmem:[%s1757_s3 + $0x18] sm:$0xff]  }
  0x31   : > { %v1537_v8 = vld [vmem:[%s1757_s3 + $0x10] sm:$0xff]   ;;  %v1538_v9 = vld [vmem:[%s1757_s3 + $0x8] sm:$0xff]   ;;  %v1539_v10 = vld [vmem:[%s1757_s3] sm:$0xff]  }
  0x32   : > { %1315 = vmatpush3.bf16.msra.mxu0 %v1491_v22  ;;  %v1540_v11 = vld [vmem:[%s1759_s5 + $0x18] sm:$0xff]   ;;  %v1541_v12 = vld [vmem:[%s1759_s5 + $0x10] sm:$0xff]   ;;  %v1223_v22 = vld [vmem:[%s1756_s2] ss:$0 sm:$0xff] }
  0x33   : > { %1337 = vmatpush3.bf16.msra.mxu1 %v1492_v23  ;;  %1316 = vmatprep.subr.bf16.mxu0 %v1493_v24 }
  0x34   : > { %1338 = vmatprep.subr.bf16.mxu1 %v1494_v25 }
  0x36   : > { %1317 = vmatpush3.bf16.msra.mxu0 %v1495_v26 }
  0x37   : > { %1339 = vmatpush3.bf16.msra.mxu1 %v1496_v27  ;;  %1318 = vmatprep.subr.bf16.mxu0 %v1497_v28 }
  0x38   : > { %1340 = vmatprep.subr.bf16.mxu1 %v1498_v29 }
  0x3a   : > { %1319 = vmatpush3.bf16.msra.mxu0 %v1499_v30 }
  0x3b   : > { %1341 = vmatpush3.bf16.msra.mxu1 %v1500_v31  ;;  %1348 = vmatprep.subr.bf16.mxu0 %v1505_v38 }
  0x3c   : > { %1393 = vmatprep.subr.bf16.mxu1 %v1589_v39 }
  0x3d   : > { %810 = vmatmul.mubr.bf16.vlgmr.msra.gmra.mxu0 %v1224_v34 }
  0x3e   : > { %850 = vmatmul.mubr.bf16.vlgmr.msra.gmra.mxu1 %v1226_v36  ;;  %1349 = vmatpush3.bf16.msra.mxu0 %v1506_v40  ;;  %v1542_v40 = vld [vmem:[%s1759_s5 + $0x8] sm:$0xff]  }
  0x3f   : > { %1394 = vmatpush3.bf16.msra.mxu1 %v1507_v41  ;;  %1350 = vmatprep.subr.bf16.mxu0 %v1508_v42  ;;  %v1543_v41 = vld [vmem:[%s1759_s5] sm:$0xff]  }
  0x40   : > { %1395 = vmatprep.subr.bf16.mxu1 %v1589_v39  ;;  %1409 = vmatprep.mubr.msk.bf16.mxu1 %vm1590_vm0, %v1589_v39  ;;  %v1287_v42 = vld [vmem:[%s1758_s4] ss:$0 sm:$0xff] }
  0x41   : > { %889 = vmatprep.mubr.bf16.mxu0 %v1229_v62 }
  0x42   : > { %1351 = vmatpush3.bf16.msra.mxu0 %v1509_v43 }
  0x43   : > { %1396 = vmatpush3.bf16.msra.mxu1 %v1510_v44  ;;  %1352 = vmatprep.subr.bf16.mxu0 %v1511_v45 }
  0x44   : > { %1397 = vmatprep.subr.bf16.mxu1 %v1589_v39 }
  0x46   : > { %1353 = vmatpush3.bf16.msra.mxu0 %v1512_v46 }
  0x47   : > { %1398 = vmatpush3.bf16.msra.mxu1 %v1513_v47  ;;  %1354 = vmatprep.subr.bf16.mxu0 %v1514_v48 }
  0x48   : > { %1399 = vmatprep.subr.bf16.mxu1 %v1589_v39 }
  0x4a   : > { %1355 = vmatpush3.bf16.msra.mxu0 %v1515_v49 }
  0x4b   : > { %1400 = vmatpush3.bf16.msra.mxu1 %v1516_v50  ;;  %1356 = vmatprep.subr.bf16.mxu0 %v1517_v51 }
  0x4c   : > { %1401 = vmatprep.subr.bf16.mxu1 %v1589_v39 }
  0x4e   : > { %1357 = vmatpush3.bf16.msra.mxu0 %v1518_v52 }
  0x4f   : > { %1402 = vmatpush3.bf16.msra.mxu1 %v1519_v53  ;;  %1358 = vmatprep.subr.bf16.mxu0 %v1520_v54 }
  0x50   : > { %1403 = vmatprep.subr.bf16.mxu1 %v1589_v39 }
  0x52   : > { %1359 = vmatpush3.bf16.msra.mxu0 %v1521_v55 }
  0x53   : > { %1404 = vmatpush3.bf16.msra.mxu1 %v1522_v56  ;;  %1360 = vmatprep.subr.bf16.mxu0 %v1523_v57 }
  0x54   : > { %1405 = vmatprep.subr.bf16.mxu1 %v1589_v39 }
  0x56   : > { %1361 = vmatpush3.bf16.msra.mxu0 %v1524_v58 }
  0x57   : > { %1406 = vmatpush3.bf16.msra.mxu1 %v1525_v59  ;;  %1362 = vmatprep.subr.bf16.mxu0 %v1526_v61 }
  0x58   : > { %1407 = vmatprep.subr.bf16.mxu1 %v1589_v39 }
  0x5a   : > { %1363 = vmatpush3.bf16.msra.mxu0 %v1527_v63 }
  0x5b   : > { %1408 = vmatpush3.bf16.msra.mxu1 %v1528_v0  ;;  %1413 = vmatprep.subr.bf16.mxu0 %v1589_v39 }
  0x5c   : > { %1433 = vmatprep.subr.bf16.mxu1 %v1589_v39 }
  0x5d   : > { %890 = vmatmul.mubr.bf16.vlgmr.msra.gmra.mxu0 %v1228_v1 }
  0x5e   : > { %1410 = vmatmul.mubr.bf16.vlgmr.msra.gmra.mxu1 %v1531_v2  ;;  %1429 = vmatprep.mubr.msk.bf16.mxu0 %vm1590_vm0, %v1589_v39 }
  0x5f   : > { %1441 = vmatprep.mubr.msk.bf16.mxu1 %vm1590_vm0, %v1589_v39  ;;  %1414 = vmatpush3.bf16.msra.mxu0 %v1532_v3 }
  0x60   : > { %1415 = vmatprep.subr.bf16.mxu0 %v1589_v39  ;;  %1434 = vmatpush3.bf16.msra.mxu1 %v1540_v11 }
  0x61   : > { %1435 = vmatprep.subr.bf16.mxu1 %v1589_v39 }
  0x63   : > { %1416 = vmatpush3.bf16.msra.mxu0 %v1533_v4 }
  0x64   : > { %1417 = vmatprep.subr.bf16.mxu0 %v1589_v39  ;;  %1436 = vmatpush3.bf16.msra.mxu1 %v1541_v12 }
  0x65   : > { %1437 = vmatprep.subr.bf16.mxu1 %v1589_v39 }
  0x67   : > { %1418 = vmatpush3.bf16.msra.mxu0 %v1534_v5 }
  0x68   : > { %1419 = vmatprep.subr.bf16.mxu0 %v1589_v39  ;;  %1438 = vmatpush3.bf16.msra.mxu1 %v1542_v40 }
  0x69   : > { %1439 = vmatprep.subr.bf16.mxu1 %v1589_v39 }
  0x6b   : > { %1420 = vmatpush3.bf16.msra.mxu0 %v1535_v6 }
  0x6c   : > { %1421 = vmatprep.subr.bf16.mxu0 %v1589_v39  ;;  %1440 = vmatpush3.bf16.msra.mxu1 %v1543_v41 }
  0x6f   : > { %1422 = vmatpush3.bf16.msra.mxu0 %v1536_v7 }
  0x70   : > { %1423 = vmatprep.subr.bf16.mxu0 %v1589_v39 }
  0x73   : > { %1424 = vmatpush3.bf16.msra.mxu0 %v1537_v8 }
  0x74   : > { %1425 = vmatprep.subr.bf16.mxu0 %v1589_v39 }
  0x77   : > { %1426 = vmatpush3.bf16.msra.mxu0 %v1538_v9 }
  0x78   : > { %1427 = vmatprep.subr.bf16.mxu0 %v1589_v39  ;;  %v1296_v39 = vld [vmem:[%s1760_s6] ss:$0 sm:$0xff] }
  0x7b   : > { %1428 = vmatpush3.bf16.msra.mxu0 %v1539_v10 }
  0xfd   : > { %v1320_v13 = vpop.f32.mrf.mxu0 }
  0xfe   : > { %v1342_v14 = vpop.f32.mrf.mxu1 }
  0xff   : > { %v1321_v15 = vpop.f32.mrf.mxu0 }
 0x100   : > { %v1343_v16 = vpop.f32.mrf.mxu1  ;;  %v1322_v21 = vadd.f32 %v1321_v15, %v1320_v13 }
 0x101   : > { %v1323_v17 = vpop.f32.mrf.mxu0  ;;  %v1344_v24 = vadd.f32 %v1343_v16, %v1342_v14 }
 0x102   : > { %v1345_v18 = vpop.f32.mrf.mxu1  ;;  %v812_v23 = vadd.f32 %v1322_v21, %v1223_v22 }
 0x103   : > { %v1324_v19 = vpop.f32.mrf.mxu0 }
 0x104   : > { %v1346_v20 = vpop.f32.mrf.mxu1  ;;  %v852_v28 = vadd.f32 %v1344_v24, %v812_v23 }
 0x11d   : > { %v1364_v25 = vpop.f32.mrf.mxu0 }
 0x11e   : > { %v931_v26 = vpop.f32.mrf.mxu1 }
 0x11f   : > { %v1365_v27 = vpop.f32.mrf.mxu0 }
 0x120   : > { %v1366_v29 = vadd.f32 %v1365_v27, %v1364_v25  ;;  %v1411_v30 = vpop.f32.mrf.mxu1 }
 0x121   : > { %v1367_v31 = vpop.f32.mrf.mxu0 }
 0x122   : > { %v892_v32 = vadd.f32 %v1366_v29, %v852_v28  ;;  %v934_v33 = vpop.f32.mrf.mxu1 }
 0x123   : > { %v1368_v34 = vpop.f32.mrf.mxu0 }
 0x124   : > { %v932_v35 = vadd.f32 %v931_v26, %v892_v32  ;;  %v1412_v36 = vpop.f32.mrf.mxu1 }
 0x126   : > { %v937_v37 = vmax.f32 %v932_v35, 0.0 }
 0x128   : > { %v938_v38 = vpack.c.bf16 %v937_v37, %v937_v37 }
 0x12a   : > { %1430 = vmatmul.mubr.bf16.vlgmr.msra.gmra.mxu0 %v938_v38 }
 0x1ea   : > { %v1044_v43 = vpop.f32.mrf.mxu0 }
 0x1eb   : > { %v1045_v44 = vadd.f32 %v1287_v42, %v1044_v43 }
 0x1ec   : > { %v1431_v45 = vpop.f32.mrf.mxu0 }
 0x1ed   : > { %v1050_v46 = vmax.f32 %v1045_v44, 0.0 }
 0x1ee   : > { %v1047_v47 = vpop.f32.mrf.mxu0 }
 0x1ef   : > { %v1051_v48 = vpack.c.bf16 %v1050_v46, %v1050_v46 }
 0x1f0   : > { %v1432_v49 = vpop.f32.mrf.mxu0 }
 0x1f1   : > { %1442 = vmatmul.mubr.msk.bf16.vlgmr.msra.gmra.mxu1 %vm1091_vm1, %v1051_v48 }
 0x2b1   : > { %v1129_v50 = vpop.f32.mrf.mxu1 }
 0x2b2   : > { %v1130_v51 = vadd.f32 %v1296_v39, %v1129_v50 }
 0x2b3   : > { %v1443_v52 = vpop.f32.mrf.mxu1 }
 0x2b4   : > { %v1136_v53 = vsel %vm1135_vm2, %v1130_v51, -inf }
 0x2b5   : > { %1137 = vmax.xlane.f32.xlu0 %v1136_v53  ;;  %v1132_v54 = vpop.f32.mrf.mxu1 }
 0x2b7   : > { %v1444_v55 = vpop.f32.mrf.mxu1 }
 0x33e   : > { %v1138_v56 = vpop.xlane.xlu0 %1137 }
 0x33f   : > { %v1139_v57 = vsub.f32 %v1130_v51, %v1138_v56 }
 0x341   : > { %v1140_v58 = vmul.f32 1.442695, %v1139_v57 }
 0x343   : > { %1544 = vpow2.f32 %v1140_v58 }
 0x350   : > { %v1545_v59 = vpop.eup %1544 }
 0x351   : > { %v1142_v60 = vsel %vm1135_vm2, %v1545_v59, 0.0 }
 0x352   : > { %1143 = vadd.xlane.f32.xlu0 %v1142_v60 }
 0x3db   : > { %v1144_v61 = vpop.xlane.xlu0 %1143 }
 0x3dc   : > { %1546 = vlog2.f32 %v1144_v61 }
 0x3e9   : > { %v1547_v62 = vpop.eup %1546 }
 0x3ea   : > { %v1146_v63 = vmul.f32 0.6931472, %v1547_v62 }
 0x3ec   : > { %v1147_v0 = vsub.f32 %v1139_v57, %v1146_v63 }
 0x3ee   : > { %1148 = vst.msk [vmem:[%s291_s29] sm:$0xff] %vm1135_vm2, %v1147_v0 }
 0x3ef PF: > { %s18_s24 = sadd.s32 1, %s1584_s24  }
 0x3f0   : > { %p15_p1 = scmp.ge.s32.totalorder %s18_s24, 6  }
 0x3f2   :  { %17 = sbr.rel (!%p15_p1) target bundleno = 1 (0x1), region = 83 }
 0x3f7   :  { %1168 = vsyncpa [#allocation3], 1 }
 0x3f8   :  { %1170 = vsyncpa [#allocation3 + $0x1], 1 }

</bundles_post_ra>
